<compile_context>
chip_gen: v6e
topology: v6e:2x2x1
jax: 0.10.0
libtpu: 0.0.40
codegen_flags: <defaults>
</compile_context>

<pallas_src>
import jax
import jax.numpy as jnp
from jax import lax
from jax.experimental import pallas as pl
from jax.experimental.pallas import tpu as pltpu


def gemm_swish_kernel(x_ref, wt_ref, b_ref, o_ref):
    """One N-tile: y = x @ Wt + b, then swish -> /2 -> clamp -> tanh."""
    # x_ref: (B, K) resident, wt_ref: (K, tn) pre-transposed, b_ref: (1, tn)
    y = jnp.dot(x_ref[...], wt_ref[...], preferred_element_type=jnp.float32)
    y = y + b_ref[...]                       # bias add (broadcast over batch)
    y = (y * jax.nn.sigmoid(y)) * 0.5        # swish fused with the /2 (EUP exp)
    y = jnp.clip(y, -1.0, 1.0)               # clamp
    y = jnp.tanh(y)                          # tanh (EUP); output already in (-1, 1)
    # final clamp(-1, 1) is a provable no-op after tanh — omitted
    o_ref[...] = y.astype(o_ref.dtype)


def prepare_params(weight, bias):
    """One-time (init-time) param prep, outside the hot path.

    torch nn.Linear stores W as (N, K); pre-transpose to (K, N) so the kernel
    never needs an in-kernel transpose of the weight tile.  Bias is reshaped
    to (1, N) so it tiles on the lane axis.
    """
    return jnp.transpose(weight), bias.reshape(1, -1)


def _grid_plan(n):
    """Return (n_outer, n_inner, dimension_semantics) for the N split."""
    kind = ""
    try:
        kind = jax.devices()[0].device_kind.lower()
    except Exception:
        pass
    if "v7" in kind:
        # 2 TensorCores/chip: shard the outer axis across cores, keep a small
        # inner pipeline per core so each TC overlaps its own weight DMA.
        n_outer, n_inner = 2, 2
        sem = (pltpu.CORE_PARALLEL, pltpu.ARBITRARY)
    else:
        # Single TC (v5e/v6e): 2-way N pipeline hides the weight stream.
        n_outer, n_inner = 1, 2
        sem = (pltpu.ARBITRARY, pltpu.ARBITRARY)
    # Fall back gracefully if N is too small for the chosen split.
    while n_inner > 1 and n % (n_outer * n_inner * 128) != 0:
        n_inner //= 2
    while n_outer > 1 and n % (n_outer * n_inner * 128) != 0:
        n_outer //= 2
        sem = (pltpu.ARBITRARY, pltpu.ARBITRARY)
    return n_outer, n_inner, sem


def gemm_swish_divide_clamp_tanh_clamp(x, weight_t, bias2, *, use_bf16=False):
    """x: (B, K), weight_t: (K, N) pre-transposed, bias2: (1, N)."""
    B, K = x.shape
    Kw, N = weight_t.shape
    assert Kw == K and bias2.shape == (1, N)
    out_dtype = x.dtype

    n_outer, n_inner, sem = _grid_plan(N)
    tn = N // (n_outer * n_inner)
    assert tn % 128 == 0 and B % 8 == 0 and K % 128 == 0

    if use_bf16:
        # Halves the DMA-bound weight stream; accumulation stays f32.
        # NOTE: does not meet the f32 atol=2e-5 check — gate accordingly.
        x = x.astype(jnp.bfloat16)
        weight_t = weight_t.astype(jnp.bfloat16)

    def col(c, j):
        return c * n_inner + j

    return pl.pallas_call(
        gemm_swish_kernel,
        out_shape=jax.ShapeDtypeStruct((B, N), out_dtype),
        grid_spec=pltpu.PrefetchScalarGridSpec(
            num_scalar_prefetch=0,
            grid=(n_outer, n_inner),
            in_specs=[
                pl.BlockSpec((B, K), lambda c, j: (0, 0)),            # x: resident
                pl.BlockSpec((K, tn), lambda c, j: (0, col(c, j))),   # W^T N-tile (pipelined)
                pl.BlockSpec((1, tn), lambda c, j: (0, col(c, j))),   # bias N-tile
            ],
            out_specs=pl.BlockSpec((B, tn), lambda c, j: (0, col(c, j))),
        ),
        compiler_params=pltpu.CompilerParams(dimension_semantics=sem),
    )(x, weight_t, bias2)


def reference(x, weight, bias):
    y = jnp.dot(x, weight.T, precision=lax.Precision.HIGHEST) + bias
    y = y * jax.nn.sigmoid(y)
    y = y / 2.0
    y = jnp.clip(y, -1.0, 1.0)
    y = jnp.tanh(y)
    y = jnp.clip(y, -1.0, 1.0)
    return y


if __name__ == "__main__":
    in_features = 1024
    out_features = 512
    batch = 16

    key = jax.random.PRNGKey(0)
    kx, kw, kb = jax.random.split(key, 3)

    # Deterministic parameter init (matches nn.Linear shapes: W (out,in), b (out,))
    bound = 1.0 / (in_features ** 0.5)
    weight = jax.random.uniform(
        kw, (out_features, in_features), jnp.float32, -bound, bound
    )
    bias = jax.random.uniform(kb, (out_features,), jnp.float32, -bound, bound)
    x = jax.random.normal(kx, (batch, in_features), jnp.float32)

    # One-time weight transpose / bias reshape at init (outside the hot path).
    weight_t, bias2 = prepare_params(weight, bias)

    out = gemm_swish_divide_clamp_tanh_clamp(x, weight_t, bias2)
    out = jax.block_until_ready(out)

    ref = reference(x, weight, bias)
    assert out.shape == (batch, out_features)
    err = float(jnp.max(jnp.abs(out - ref)))
    assert err < 2e-5, err
    print("KERNEL_OK")
</pallas_src>

<mosaic_0001>
module attributes {stable_mosaic.version = 11 : i64} {
  func.func @gemm_swish_kernel(%arg0: i32, %arg1: i32, %arg2: memref<16x1024xf32, #tpu.memory_space<vmem>>, %arg3: memref<1024x256xf32, #tpu.memory_space<vmem>>, %arg4: memref<1x256xf32, #tpu.memory_space<vmem>>, %arg5: memref<16x256xf32, #tpu.memory_space<vmem>>) attributes {dimension_semantics = [#tpu.dimension_semantics<arbitrary>, #tpu.dimension_semantics<arbitrary>], iteration_bounds = array<i64: 1, 2>, scalar_prefetch = 0 : i64, scratch_operands = 0 : i64, tpu.core_type = #tpu.core_type<tc>, window_params = [{pipeline_mode = #tpu.pipeline_mode<synchronous>, transform_indices = @transform_0, window_bounds = array<i64: 16, 1024>}, {transform_indices = @transform_1, window_bounds = array<i64: 1024, 256>}, {transform_indices = @transform_2, window_bounds = array<i64: 1, 256>}, {transform_indices = @transform_3, window_bounds = array<i64: 16, 256>}]} {
    %c0 = arith.constant 0 : index
    %c0_0 = arith.constant 0 : index
    %0 = vector.load %arg2[%c0, %c0_0] : memref<16x1024xf32, #tpu.memory_space<vmem>>, vector<16x1024xf32>
    %c0_1 = arith.constant 0 : index
    %c0_2 = arith.constant 0 : index
    %1 = vector.load %arg3[%c0_1, %c0_2] : memref<1024x256xf32, #tpu.memory_space<vmem>>, vector<1024x256xf32>
    %cst = arith.constant dense<0.000000e+00> : vector<16x256xf32>
    %2 = tpu.matmul %0, %1, %cst {dimension_numbers = #tpu.dot_dimension_numbers<[1], [0], [0], [1], [0, 0, 1, 1], [], []>} : vector<16x1024xf32>, vector<1024x256xf32>, vector<16x256xf32> -> vector<16x256xf32>
    %c0_3 = arith.constant 0 : index
    %c0_4 = arith.constant 0 : index
    %3 = vector.load %arg4[%c0_3, %c0_4] : memref<1x256xf32, #tpu.memory_space<vmem>>, vector<1x256xf32>
    %4 = vector.broadcast %3 : vector<1x256xf32> to vector<16x256xf32>
    %5 = arith.addf %2, %4 : vector<16x256xf32>
    %6 = arith.negf %5 : vector<16x256xf32>
    %7 = math.exp %6 : vector<16x256xf32>
    %cst_5 = arith.constant 1.000000e+00 : f32
    %8 = vector.broadcast %cst_5 : f32 to vector<16x256xf32>
    %9 = arith.addf %8, %7 : vector<16x256xf32>
    %10 = arith.divf %8, %9 : vector<16x256xf32>
    %11 = arith.mulf %5, %10 : vector<16x256xf32>
    %cst_6 = arith.constant 5.000000e-01 : f32
    %12 = vector.broadcast %cst_6 : f32 to vector<16x256xf32>
    %13 = arith.mulf %11, %12 : vector<16x256xf32>
    %cst_7 = arith.constant -1.000000e+00 : f32
    %cst_8 = arith.constant 1.000000e+00 : f32
    %14 = vector.broadcast %cst_7 : f32 to vector<16x256xf32>
    %15 = arith.maximumf %14, %13 : vector<16x256xf32>
    %16 = vector.broadcast %cst_8 : f32 to vector<16x256xf32>
    %17 = arith.minimumf %16, %15 : vector<16x256xf32>
    %18 = math.tanh %17 : vector<16x256xf32>
    %c0_9 = arith.constant 0 : index
    %c0_10 = arith.constant 0 : index
    %19 = vector.load %arg5[%c0_9, %c0_10] : memref<16x256xf32, #tpu.memory_space<vmem>>, vector<16x256xf32>
    tpu.vector_store %arg5[%c0_9, %c0_10], %18 {strides = array<i32>} : memref<16x256xf32, #tpu.memory_space<vmem>>, vector<16x256xf32>,
    return
  }
  func.func @transform_0(%arg0: i32, %arg1: i32) -> (i32, i32) {
    %c0_i32 = arith.constant 0 : i32
    %c0_i32_0 = arith.constant 0 : i32
    %c0_i32_1 = arith.constant 0 : i32
    return %c0_i32, %c0_i32_0 : i32, i32
  }
  func.func @transform_1(%arg0: i32, %arg1: i32) -> (i32, i32) {
    %c2_i32 = arith.constant 2 : i32
    %0 = arith.muli %arg0, %c2_i32 : i32
    %1 = arith.addi %0, %arg1 : i32
    %c0_i32 = arith.constant 0 : i32
    %c0_i32_0 = arith.constant 0 : i32
    return %c0_i32, %1 : i32, i32
  }
  func.func @transform_2(%arg0: i32, %arg1: i32) -> (i32, i32) {
    %c2_i32 = arith.constant 2 : i32
    %0 = arith.muli %arg0, %c2_i32 : i32
    %1 = arith.addi %0, %arg1 : i32
    %c0_i32 = arith.constant 0 : i32
    %c0_i32_0 = arith.constant 0 : i32
    return %c0_i32, %1 : i32, i32
  }
  func.func @transform_3(%arg0: i32, %arg1: i32) -> (i32, i32) {
    %c2_i32 = arith.constant 2 : i32
    %0 = arith.muli %arg0, %c2_i32 : i32
    %1 = arith.addi %0, %arg1 : i32
    %c0_i32 = arith.constant 0 : i32
    %c0_i32_0 = arith.constant 0 : i32
    return %c0_i32, %1 : i32, i32
  }
}

</mosaic_0001>

<bundles_post_ra>
// kernel: tpu_custom_call.1
= control target key start
LH: loop header
LB: loop body
LE: loop exit
PB: predicated region body
PF: predicated region fallthrough
CT: control target
= control target key end

     0   :  { %8 = vsyncpa [#allocation3], 0  ;;  %s1852_s0 = inlined_call_operand.hbm [shape: f32[16,1024], index: 0, kind: input, shape index: {}]   ;;  %s1853_s1 = inlined_call_operand.hbm [shape: f32[1024,512], index: 1, kind: input, shape index: {}]   ;;  %s1854_s2 = inlined_call_operand.hbm [shape: f32[1,512], index: 2, kind: input, shape index: {}]   ;;  %s1855_s3 = inlined_call_operand.hbm [shape: f32[16,512], index: 3, kind: output, shape index: {}]  }
   0x1   :  { %9 = vsyncpa [#allocation6], 0 }
   0x2   :  { %11 = vsyncpa [#allocation6 + $0x1], 0 }
   0x3   :  { %12 = vsyncpa [#allocation4], 0 }
   0x4   :  { %14 = vsyncpa [#allocation4 + $0x1], 0  ;;  %s1393_s12 = smov 0   ;;  %s1395_s13 = smov 0  }
   0x5   :  { %s1397_s14 = smov 0   ;;  %s1399_s15 = smov 0  }
   0x6   :  { %s1401_s16 = smov 0   ;;  %s1403_s17 = smov 0  }
   0x7 LB: > { %s29_s18 = sadd.s32 1, %s1355_s16  ;;  %s64_s19 = sadd.s32 1, %s1347_s14  ;;  %s1359_s17 = sphi %s1403_s17, %s20_s17   ;;  %s1355_s16 = sphi %s1401_s16, %s1875_s16   ;;  %s1351_s15 = sphi %s1399_s15, %s1874_s15   ;;  %s1347_s14 = sphi %s1397_s14, %s1873_s14   ;;  %s1343_s13 = sphi %s1395_s13, %s1872_s13   ;;  %s1339_s12 = sphi %s1393_s12, %s1871_s12  }
   0x8   : > { %p30_p0 = scmp.ge.s32.totalorder %s29_s18, 2  ;;  %p71_p1 = scmp.ne.s32.totalorder %s1347_s14, %s1343_s13 }
   0x9   : > { %p72_p2 = scmp.eq.s32.totalorder %s1359_s17, 0  ;;  %p1109_p5 = scmp.lt.s32.totalorder %s1359_s17, 2 }
   0xa   : > { %s1877_s18 = smov (%p30_p0, %s29_s18), 0  ;;  %s174_s21 = sand.u32 1, %s1359_s17  }
   0xb   : > { %p73_p4 = por %p72_p2, %p71_p1  ;;  %s61_s20 = ssub.s32 %s1355_s16, %s1877_s18 }
   0xc   : > { %p62_p6 = scmp.eq.s32.totalorder %s61_s20, 0  ;;  %s176_s22 = sand.u32 1, %s1347_s14  }
   0xd   : > { %s1080_s23 = sshll.u32 %s1355_s16, 8  ;;  %s1056_s25 = sshll.u32 %s176_s22, 11 }
   0xe   : > { %s1441_s24 = scalar_select %p62_p6, %s1347_s14, %s64_s19  }
   0xf   : > { %s186_s28 = scalar_lea.hbm %s1853_s1, %s1080_s23  ;;  %p1448_p7 = pnand %p1109_p5, %p73_p4 }
  0x10   : > { %s178_s30 = scalar_lea.vmem [#allocation5], %s1056_s25  ;;  %s1452_s5 = scalar_lea.sflag [#allocation6], %s174_s21 }
  0x11   : > { %s187_s4 = sshll.u32 %s178_s30, 4  ;;  %p1857_p8 = pneg %p1448_p7  ;;  %s188_s4 = int_to_ptr.vmem [resolvable:$true] %s187_s4 }
  0x12   : > { %s1206_s6 = scalar_lea.vmem %s188_s4, 32768  ;;  %s1361_s7 = smov [#allocation5]  }
  0x13   : > { %p1207_p9 = scmp.ne.s32.totalorder %s188_s4, %s1206_s6  ;;  %s1211_s8 = sshll.u32 %s1361_s7, 4  ;;  %s1212_s8 = int_to_ptr.vmem [resolvable:$false] %s1211_s8 }
  0x14   : > { %s1213_s9 = scalar_lea.vmem %s1212_s8, 65536  ;;  %p1214_p12 = scmp.lt.s32.totalorder %s188_s4, %s1212_s8 }
  0x15   : > { %p1209_p10 = pnand %p1207_p9, %p1857_p8  ;;  %p1215_p13 = scmp.lt.s32.totalorder %s1213_s9, %s1206_s6 }
  0x17   : > { %p1210_p11 = pneg %p1209_p10  ;;  %p1216_p0 = por %p1215_p13, %p1214_p12 }
  0x19   : > { %p1217_p2 = pnand %p1216_p0, %p1210_p11 }
  0x1b   : > { %1220 = shalt.err (!%p1217_p2)
}
  0x1c   : > { %s1362_s10 = smov 512   ;;  %s1363_s11 = smov 256  }
  0x1d   : > { %s1364_s19 = smov 16   ;;  %s1463_s20 = sadd.s32 4294967295, %s1359_s17  }
  0x1e   : > { %1100 = dma.hbm_to_vmem [thread:$0]  (!%p1448_p7), %s186_s28, 32768, %s188_s4, %s1452_s5, %s1362_s10, %s1363_s11, %s1364_s19  }
  0x1f   : > { %s1052_s21 = sadd.s32 4294967294, %s1359_s17   ;;  %p77_p4 = scmp.ne.s32.totalorder %s1343_s13, %s1339_s12 }
  0x20   : > { %p1856_p5 = scmp.eq.s32.totalorder %s1463_s20, 0  ;;  %p135_p6 = scmp.eq.s32.totalorder %s1463_s20, 1 }
  0x21   : > { %p141_p9 = scmp.eq.s32.totalorder %s1052_s21, 1  ;;  %p1053_p11 = scmp.ge.s32.totalorder %s1359_s17, 1 }
  0x22   : > { %p1472_p10 = por %p1856_p5, %p77_p4  ;;  %p1480_p12 = por %p135_p6, %p71_p1 }
  0x23   : > { %p1484_p13 = por %p141_p9, %p77_p4  ;;  %p148_p0 = scmp.lt.s32.totalorder %s1359_s17, 3 }
  0x24   : > { %s1861_s25 = scalar_select %p1480_p12, 1, 0 }
  0x25   : > { %s1862_s26 = scalar_select %p1484_p13, 1, 0 }
  0x26   : > { %p1489_p2 = pnand %p1053_p11, %p148_p0  ;;  %s1365_s28 = smov [#allocation2]  }
  0x27   : > { %s160_s30 = sshll.u32 %s1365_s28, 4  ;;  %s1059_s4 = sshll.u32 %s176_s22, 1  ;;  %s161_s30 = int_to_ptr.vmem [resolvable:$true] %s160_s30 }
  0x28   : > { %p1093_p3 = pneg %p1489_p2  ;;  %s1081_s6 = sshll.u32 %s1355_s16, 5 }
  0x29   : > { %s1507_s10 = scalar_lea.hbm %s1854_s2, %s1081_s6  ;;  %s201_s11 = scalar_lea.vmem [#allocation7], %s1059_s4 }
  0x2a   : > { %p1500_p1 = pnand %p1093_p3, %p1856_p5  ;;  %s211_s19 = sshll.u32 %s201_s11, 4  ;;  %s212_s19 = int_to_ptr.vmem [resolvable:$true] %s211_s19 }
  0x2b   : > { %s1232_s21 = scalar_lea.vmem %s161_s30, 2048  ;;  %p1240_p0 = scmp.lt.s32.totalorder %s161_s30, %s161_s30 }
  0x2c   : > { %p1223_p4 = pneg %p1500_p1  ;;  %p1233_p6 = scmp.ne.s32.totalorder %s161_s30, %s1232_s21 }
  0x2d   : > { %p1241_p3 = scmp.lt.s32.totalorder %s1232_s21, %s1232_s21 }
  0x2e   : > { %p1235_p9 = pnand %p1233_p6, %p1223_p4 }
  0x2f   : > { %p1242_p5 = por %p1241_p3, %p1240_p0 }
  0x30   : > { %p1236_p11 = pneg %p1235_p9 }
  0x32   : > { %p1243_p8 = pnand %p1242_p5, %p1236_p11 }
  0x34   : > { %1246 = shalt.err (!%p1243_p8)
}
  0x35   : > { %s1366_s22 = smov 1024   ;;  %s1367_s28 = smov 64  }
  0x36   : > { %1096 = dma.hbm_to_vmem [thread:$0]  (!%p1500_p1), %s1852_s0, 2048, %s161_s30, [#allocation3], %s1366_s22, %s1366_s22, %s1367_s28  }
  0x37   : > { %s1260_s8 = scalar_lea.vmem %s212_s19, 32  ;;  %p1865_p12 = pneg %p1448_p7 }
  0x38   : > { %p1261_p13 = scmp.ne.s32.totalorder %s212_s19, %s1260_s8  ;;  %s1368_s9 = smov [#allocation7]  }
  0x39   : > { %s1265_s11 = sshll.u32 %s1368_s9, 4  ;;  %s1266_s11 = int_to_ptr.vmem [resolvable:$false] %s1265_s11 }
  0x3a   : > { %p1263_p4 = pnand %p1261_p13, %p1865_p12  ;;  %s1267_s21 = scalar_lea.vmem %s1266_s11, 64 }
  0x3b   : > { %p1268_p8 = scmp.lt.s32.totalorder %s212_s19, %s1266_s11  ;;  %p1269_p5 = scmp.lt.s32.totalorder %s1267_s21, %s1260_s8 }
  0x3c   : > { %p1264_p6 = pneg %p1263_p4 }
  0x3d   : > { %p1270_p9 = por %p1269_p5, %p1268_p8 }
  0x3f   : > { %p1271_p11 = pnand %p1270_p9, %p1264_p6 }
  0x41   : > { %1274 = shalt.err (!%p1271_p11)
}
  0x42   : > { %1103 = dma.hbm_to_vmem [thread:$0]  (!%p1448_p7), %s1507_s10, 32, %s212_s19, %s1452_s5  }
  0x43   : > { %220 = sbr.rel (%p1489_p2) target bundleno = 481 (0x1e1), region = 32  ;;  %p1866_p12 = scmp.eq.s32.totalorder (!%p1489_p2), %s1463_s20, 0 }
  0x48   : > { %1326 = dma.done.wait (%p1866_p12), [#allocation3], 2048   ;;  %p1867_p13 = pmov %p1866_p12 }
  0x49   : > { %s226_s30 = sand.u32 1, %s1463_s20   ;;  %s1531_s7 = sand.u32 1, %s1343_s13  }
  0x4a   : > { %1328 = vsyncadd (%p1867_p13), [#allocation3], 4294965248  ;;  %s1064_s29 = sshll.u32 %s1531_s7, 11  ;;  %s227_s22 = scalar_lea.sflag [#allocation6], %s226_s30 }
  0x4b   : > { %s1534_s28 = scalar_lea.vmem [#allocation5], %s1064_s29 }
  0x4c   : > { %1330 = dma.done.wait (%p1472_p10), %s227_s22, 32800  }
  0x4d   : > { %1332 = vsyncadd (%p1472_p10), %s227_s22, 4294934496  ;;  %v323_v0 = vld [vmem:[%s1534_s28 + $0xf8] sm:$0xff]  ;;  %v322_v2 = vld [vmem:[%s1534_s28 + $0xf0] sm:$0xff]  ;;  %s1065_s5 = sshll.u32 %s1531_s7, 1  ;;  %s1066_s23 = sshll.u32 %s1531_s7, 5 }
  0x4e   : > { %v387_v1 = vld [vmem:[%s1534_s28 + $0x2f8] sm:$0xff]  ;;  %560 = vmatprep.subr.mxu0 %v323_v0  ;;  %v386_v3 = vld [vmem:[%s1534_s28 + $0x2f0] sm:$0xff]  ;;  %v321_v4 = vld [vmem:[%s1534_s28 + $0xe8] sm:$0xff]  ;;  %s239_s20 = scalar_lea.vmem [#allocation7], %s1065_s5  ;;  %s1082_s27 = sshll.u32 %s1351_s15, 8 }
  0x4f   : > { %637 = vmatprep.subr.mxu1 %v387_v1  ;;  %v385_v5 = vld [vmem:[%s1534_s28 + $0x2e8] sm:$0xff]  ;;  %561 = vmatpush1.msra.mxu0 %v322_v2  ;;  %v320_v6 = vld [vmem:[%s1534_s28 + $0xe0] sm:$0xff]  ;;  %v319_v8 = vld [vmem:[%s1534_s28 + $0xd8] sm:$0xff]  ;;  %s266_s10 = scalar_lea.vmem [#allocation8], %s1066_s23  ;;  %s1802_s8 = scalar_lea.hbm %s1855_s3, %s1082_s27 }
  0x50   : > { %638 = vmatpush1.msra.mxu1 %v386_v3  ;;  %v384_v7 = vld [vmem:[%s1534_s28 + $0x2e0] sm:$0xff]  ;;  %562 = vmatprep.subr.mxu0 %v321_v4  ;;  %v383_v9 = vld [vmem:[%s1534_s28 + $0x2d8] sm:$0xff]  ;;  %v318_v10 = vld [vmem:[%s1534_s28 + $0xd0] sm:$0xff]  ;;  %s932_s19 = sshll.u32 %s266_s10, 4  ;;  %s917_s15 = scalar_lea.sflag [#allocation4], %s1531_s7  ;;  %s1804_s19 = int_to_ptr.vmem [resolvable:$true] %s932_s19 }
  0x51   : > { %639 = vmatprep.subr.mxu1 %v385_v5  ;;  %v382_v11 = vld [vmem:[%s1534_s28 + $0x2d0] sm:$0xff]  ;;  %563 = vmatpush1.msra.mxu0 %v320_v6  ;;  %v317_v12 = vld [vmem:[%s1534_s28 + $0xc8] sm:$0xff]  ;;  %v316_v14 = vld [vmem:[%s1534_s28 + $0xc0] sm:$0xff]  ;;  %s1275_s9 = scalar_lea.vmem %s1804_s19, 512  ;;  %p1868_p10 = scmp.ne.s32.totalorder %s1861_s25, 0 }
  0x52   : > { %640 = vmatpush1.msra.mxu1 %v384_v7  ;;  %v381_v13 = vld [vmem:[%s1534_s28 + $0x2c8] sm:$0xff]  ;;  %564 = vmatprep.subr.mxu0 %v319_v8  ;;  %v380_v15 = vld [vmem:[%s1534_s28 + $0x2c0] sm:$0xff]  ;;  %v315_v16 = vld [vmem:[%s1534_s28 + $0xb8] sm:$0xff]  ;;  %p1276_p7 = scmp.ne.s32.totalorder %s1804_s19, %s1275_s9  ;;  %s1369_s11 = smov [#allocation8]  }
  0x53   : > { %641 = vmatprep.subr.mxu1 %v383_v9  ;;  %565 = vmatpush1.msra.mxu0 %v318_v10  ;;  %v379_v17 = vld [vmem:[%s1534_s28 + $0x2b8] sm:$0xff]  ;;  %v314_v18 = vld [vmem:[%s1534_s28 + $0xb0] sm:$0xff]  ;;  %v313_v20 = vld [vmem:[%s1534_s28 + $0xa8] sm:$0xff]  ;;  %s1279_s21 = sshll.u32 %s1369_s11, 4  ;;  %s1280_s21 = int_to_ptr.vmem [resolvable:$false] %s1279_s21 }
  0x54   : > { %642 = vmatpush1.msra.mxu1 %v382_v11  ;;  %566 = vmatprep.subr.mxu0 %v317_v12  ;;  %v378_v19 = vld [vmem:[%s1534_s28 + $0x2b0] sm:$0xff]  ;;  %v377_v21 = vld [vmem:[%s1534_s28 + $0x2a8] sm:$0xff]  ;;  %v312_v22 = vld [vmem:[%s1534_s28 + $0xa0] sm:$0xff]  ;;  %p1277_p2 = pnand %p1276_p7, %p1868_p10  ;;  %s1281_s30 = scalar_lea.vmem %s1280_s21, 1024 }
  0x55   : > { %643 = vmatprep.subr.mxu1 %v381_v13  ;;  %567 = vmatpush1.msra.mxu0 %v316_v14  ;;  %v376_v23 = vld [vmem:[%s1534_s28 + $0x2a0] sm:$0xff]  ;;  %v311_v24 = vld [vmem:[%s1534_s28 + $0x98] sm:$0xff]  ;;  %v310_v26 = vld [vmem:[%s1534_s28 + $0x90] sm:$0xff]  ;;  %p1282_p0 = scmp.lt.s32.totalorder %s1804_s19, %s1280_s21  ;;  %p1283_p3 = scmp.lt.s32.totalorder %s1281_s30, %s1275_s9 }
  0x56   : > { %644 = vmatpush1.msra.mxu1 %v380_v15  ;;  %568 = vmatprep.subr.mxu0 %v315_v16  ;;  %v375_v25 = vld [vmem:[%s1534_s28 + $0x298] sm:$0xff]  ;;  %v374_v27 = vld [vmem:[%s1534_s28 + $0x290] sm:$0xff]  ;;  %v309_v28 = vld [vmem:[%s1534_s28 + $0x88] sm:$0xff]  ;;  %p1278_p1 = pneg %p1277_p2 }
  0x57   : > { %645 = vmatprep.subr.mxu1 %v379_v17  ;;  %569 = vmatpush1.msra.mxu0 %v314_v18  ;;  %v373_v29 = vld [vmem:[%s1534_s28 + $0x288] sm:$0xff]  ;;  %v308_v30 = vld [vmem:[%s1534_s28 + $0x80] sm:$0xff]  ;;  %v307_v32 = vld [vmem:[%s1534_s28 + $0x78] sm:$0xff]  ;;  %p1284_p4 = por %p1283_p3, %p1282_p0 }
  0x58   : > { %646 = vmatpush1.msra.mxu1 %v378_v19  ;;  %570 = vmatprep.subr.mxu0 %v313_v20  ;;  %v372_v31 = vld [vmem:[%s1534_s28 + $0x280] sm:$0xff]  ;;  %v371_v33 = vld [vmem:[%s1534_s28 + $0x278] sm:$0xff]  ;;  %v306_v34 = vld [vmem:[%s1534_s28 + $0x70] sm:$0xff] }
  0x59   : > { %647 = vmatprep.subr.mxu1 %v377_v21  ;;  %571 = vmatpush1.msra.mxu0 %v312_v22  ;;  %v370_v35 = vld [vmem:[%s1534_s28 + $0x270] sm:$0xff]  ;;  %v305_v36 = vld [vmem:[%s1534_s28 + $0x68] sm:$0xff]  ;;  %v304_v38 = vld [vmem:[%s1534_s28 + $0x60] sm:$0xff]  ;;  %p1285_p6 = pnand %p1284_p4, %p1278_p1 }
  0x5a   : > { %648 = vmatpush1.msra.mxu1 %v376_v23  ;;  %572 = vmatprep.subr.mxu0 %v311_v24  ;;  %v369_v37 = vld [vmem:[%s1534_s28 + $0x268] sm:$0xff]  ;;  %v368_v39 = vld [vmem:[%s1534_s28 + $0x260] sm:$0xff]  ;;  %v303_v40 = vld [vmem:[%s1534_s28 + $0x58] sm:$0xff] }
  0x5b   : > { %649 = vmatprep.subr.mxu1 %v375_v25  ;;  %573 = vmatpush1.msra.mxu0 %v310_v26  ;;  %v367_v41 = vld [vmem:[%s1534_s28 + $0x258] sm:$0xff]  ;;  %v302_v42 = vld [vmem:[%s1534_s28 + $0x50] sm:$0xff]  ;;  %v301_v44 = vld [vmem:[%s1534_s28 + $0x48] sm:$0xff] }
  0x5c   : > { %650 = vmatpush1.msra.mxu1 %v374_v27  ;;  %574 = vmatprep.subr.mxu0 %v309_v28  ;;  %v366_v43 = vld [vmem:[%s1534_s28 + $0x250] sm:$0xff]  ;;  %v365_v45 = vld [vmem:[%s1534_s28 + $0x248] sm:$0xff]  ;;  %v300_v46 = vld [vmem:[%s1534_s28 + $0x40] sm:$0xff] }
  0x5d   : > { %651 = vmatprep.subr.mxu1 %v373_v29  ;;  %575 = vmatpush1.msra.mxu0 %v308_v30  ;;  %v364_v47 = vld [vmem:[%s1534_s28 + $0x240] sm:$0xff]  ;;  %v299_v48 = vld [vmem:[%s1534_s28 + $0x38] sm:$0xff]  ;;  %v298_v50 = vld [vmem:[%s1534_s28 + $0x30] sm:$0xff] }
  0x5e   : > { %652 = vmatpush1.msra.mxu1 %v372_v31  ;;  %576 = vmatprep.subr.mxu0 %v307_v32  ;;  %v363_v49 = vld [vmem:[%s1534_s28 + $0x238] sm:$0xff]  ;;  %v362_v51 = vld [vmem:[%s1534_s28 + $0x230] sm:$0xff]  ;;  %v297_v52 = vld [vmem:[%s1534_s28 + $0x28] sm:$0xff] }
  0x5f   : > { %653 = vmatprep.subr.mxu1 %v371_v33  ;;  %577 = vmatpush1.msra.mxu0 %v306_v34  ;;  %v361_v53 = vld [vmem:[%s1534_s28 + $0x228] sm:$0xff]  ;;  %v296_v54 = vld [vmem:[%s1534_s28 + $0x20] sm:$0xff]  ;;  %v295_v56 = vld [vmem:[%s1534_s28 + $0x18] sm:$0xff] }
  0x60   : > { %654 = vmatpush1.msra.mxu1 %v370_v35  ;;  %578 = vmatprep.subr.mxu0 %v305_v36  ;;  %v360_v55 = vld [vmem:[%s1534_s28 + $0x220] sm:$0xff]  ;;  %v359_v57 = vld [vmem:[%s1534_s28 + $0x218] sm:$0xff]  ;;  %v294_v58 = vld [vmem:[%s1534_s28 + $0x10] sm:$0xff] }
  0x61   : > { %655 = vmatprep.subr.mxu1 %v369_v37  ;;  %579 = vmatpush1.msra.mxu0 %v304_v38  ;;  %v358_v59 = vld [vmem:[%s1534_s28 + $0x210] sm:$0xff]  ;;  %v293_v60 = vld [vmem:[%s1534_s28 + $0x8] sm:$0xff]  ;;  %v292_v62 = vld [vmem:[%s1534_s28] sm:$0xff] }
  0x62   : > { %656 = vmatpush1.msra.mxu1 %v368_v39  ;;  %580 = vmatprep.subr.mxu0 %v303_v40  ;;  %v357_v61 = vld [vmem:[%s1534_s28 + $0x208] sm:$0xff]  ;;  %v356_v63 = vld [vmem:[%s1534_s28 + $0x200] sm:$0xff]  ;;  %v355_v0 = vld [vmem:[%s1534_s28 + $0x1f8] sm:$0xff] }
  0x63   : > { %657 = vmatprep.subr.mxu1 %v367_v41  ;;  %581 = vmatpush1.msra.mxu0 %v302_v42  ;;  %v419_v1 = vld [vmem:[%s1534_s28 + $0x3f8] sm:$0xff]  ;;  %v354_v2 = vld [vmem:[%s1534_s28 + $0x1f0] sm:$0xff]  ;;  %v353_v4 = vld [vmem:[%s1534_s28 + $0x1e8] sm:$0xff] }
  0x64   : > { %658 = vmatpush1.msra.mxu1 %v366_v43  ;;  %582 = vmatprep.subr.mxu0 %v301_v44  ;;  %v418_v3 = vld [vmem:[%s1534_s28 + $0x3f0] sm:$0xff]  ;;  %v417_v5 = vld [vmem:[%s1534_s28 + $0x3e8] sm:$0xff]  ;;  %v352_v6 = vld [vmem:[%s1534_s28 + $0x1e0] sm:$0xff] }
  0x65   : > { %659 = vmatprep.subr.mxu1 %v365_v45  ;;  %583 = vmatpush1.msra.mxu0 %v300_v46  ;;  %v416_v7 = vld [vmem:[%s1534_s28 + $0x3e0] sm:$0xff]  ;;  %v351_v8 = vld [vmem:[%s1534_s28 + $0x1d8] sm:$0xff]  ;;  %v350_v10 = vld [vmem:[%s1534_s28 + $0x1d0] sm:$0xff] }
  0x66   : > { %660 = vmatpush1.msra.mxu1 %v364_v47  ;;  %584 = vmatprep.subr.mxu0 %v299_v48  ;;  %v415_v9 = vld [vmem:[%s1534_s28 + $0x3d8] sm:$0xff]  ;;  %v414_v11 = vld [vmem:[%s1534_s28 + $0x3d0] sm:$0xff]  ;;  %v349_v12 = vld [vmem:[%s1534_s28 + $0x1c8] sm:$0xff] }
  0x67   : > { %661 = vmatprep.subr.mxu1 %v363_v49  ;;  %585 = vmatpush1.msra.mxu0 %v298_v50  ;;  %v413_v13 = vld [vmem:[%s1534_s28 + $0x3c8] sm:$0xff]  ;;  %v348_v14 = vld [vmem:[%s1534_s28 + $0x1c0] sm:$0xff]  ;;  %v347_v16 = vld [vmem:[%s1534_s28 + $0x1b8] sm:$0xff] }
  0x68   : > { %662 = vmatpush1.msra.mxu1 %v362_v51  ;;  %586 = vmatprep.subr.mxu0 %v297_v52  ;;  %v412_v15 = vld [vmem:[%s1534_s28 + $0x3c0] sm:$0xff]  ;;  %v411_v17 = vld [vmem:[%s1534_s28 + $0x3b8] sm:$0xff]  ;;  %v346_v18 = vld [vmem:[%s1534_s28 + $0x1b0] sm:$0xff] }
  0x69   : > { %663 = vmatprep.subr.mxu1 %v361_v53  ;;  %587 = vmatpush1.msra.mxu0 %v296_v54  ;;  %v410_v19 = vld [vmem:[%s1534_s28 + $0x3b0] sm:$0xff]  ;;  %v345_v20 = vld [vmem:[%s1534_s28 + $0x1a8] sm:$0xff]  ;;  %v344_v22 = vld [vmem:[%s1534_s28 + $0x1a0] sm:$0xff] }
  0x6a   : > { %664 = vmatpush1.msra.mxu1 %v360_v55  ;;  %588 = vmatprep.subr.mxu0 %v295_v56  ;;  %v409_v21 = vld [vmem:[%s1534_s28 + $0x3a8] sm:$0xff]  ;;  %v408_v23 = vld [vmem:[%s1534_s28 + $0x3a0] sm:$0xff]  ;;  %v343_v24 = vld [vmem:[%s1534_s28 + $0x198] sm:$0xff] }
  0x6b   : > { %665 = vmatprep.subr.mxu1 %v359_v57  ;;  %589 = vmatpush1.msra.mxu0 %v294_v58  ;;  %v407_v25 = vld [vmem:[%s1534_s28 + $0x398] sm:$0xff]  ;;  %v342_v26 = vld [vmem:[%s1534_s28 + $0x190] sm:$0xff]  ;;  %v341_v28 = vld [vmem:[%s1534_s28 + $0x188] sm:$0xff] }
  0x6c   : > { %666 = vmatpush1.msra.mxu1 %v358_v59  ;;  %590 = vmatprep.subr.mxu0 %v293_v60  ;;  %v406_v27 = vld [vmem:[%s1534_s28 + $0x390] sm:$0xff]  ;;  %v405_v29 = vld [vmem:[%s1534_s28 + $0x388] sm:$0xff]  ;;  %v340_v30 = vld [vmem:[%s1534_s28 + $0x180] sm:$0xff] }
  0x6d   : > { %667 = vmatprep.subr.mxu1 %v357_v61  ;;  %591 = vmatpush1.msra.mxu0 %v292_v62  ;;  %v404_v31 = vld [vmem:[%s1534_s28 + $0x380] sm:$0xff]  ;;  %v339_v32 = vld [vmem:[%s1534_s28 + $0x178] sm:$0xff]  ;;  %v338_v34 = vld [vmem:[%s1534_s28 + $0x170] sm:$0xff] }
  0x6e   : > { %668 = vmatpush1.msra.mxu1 %v356_v63  ;;  %592 = vmatprep.subr.mxu0 %v355_v0  ;;  %v403_v33 = vld [vmem:[%s1534_s28 + $0x378] sm:$0xff]  ;;  %v402_v35 = vld [vmem:[%s1534_s28 + $0x370] sm:$0xff]  ;;  %v337_v36 = vld [vmem:[%s1534_s28 + $0x168] sm:$0xff] }
  0x6f   : > { %669 = vmatprep.subr.mxu1 %v419_v1  ;;  %593 = vmatpush2.msra.mxu0 %v354_v2  ;;  %v401_v37 = vld [vmem:[%s1534_s28 + $0x368] sm:$0xff]  ;;  %v336_v38 = vld [vmem:[%s1534_s28 + $0x160] sm:$0xff]  ;;  %v335_v40 = vld [vmem:[%s1534_s28 + $0x158] sm:$0xff] }
  0x70   : > { %670 = vmatpush2.msra.mxu1 %v418_v3  ;;  %594 = vmatprep.subr.mxu0 %v353_v4  ;;  %v400_v39 = vld [vmem:[%s1534_s28 + $0x360] sm:$0xff]  ;;  %v399_v41 = vld [vmem:[%s1534_s28 + $0x358] sm:$0xff]  ;;  %v334_v42 = vld [vmem:[%s1534_s28 + $0x150] sm:$0xff] }
  0x71   : > { %671 = vmatprep.subr.mxu1 %v417_v5  ;;  %595 = vmatpush2.msra.mxu0 %v352_v6  ;;  %v398_v43 = vld [vmem:[%s1534_s28 + $0x350] sm:$0xff]  ;;  %v333_v44 = vld [vmem:[%s1534_s28 + $0x148] sm:$0xff]  ;;  %v332_v46 = vld [vmem:[%s1534_s28 + $0x140] sm:$0xff] }
  0x72   : > { %672 = vmatpush2.msra.mxu1 %v416_v7  ;;  %596 = vmatprep.subr.mxu0 %v351_v8  ;;  %v397_v45 = vld [vmem:[%s1534_s28 + $0x348] sm:$0xff]  ;;  %v396_v47 = vld [vmem:[%s1534_s28 + $0x340] sm:$0xff]  ;;  %v331_v48 = vld [vmem:[%s1534_s28 + $0x138] sm:$0xff] }
  0x73   : > { %673 = vmatprep.subr.mxu1 %v415_v9  ;;  %597 = vmatpush2.msra.mxu0 %v350_v10  ;;  %v395_v49 = vld [vmem:[%s1534_s28 + $0x338] sm:$0xff]  ;;  %v330_v50 = vld [vmem:[%s1534_s28 + $0x130] sm:$0xff]  ;;  %v329_v52 = vld [vmem:[%s1534_s28 + $0x128] sm:$0xff] }
  0x74   : > { %674 = vmatpush2.msra.mxu1 %v414_v11  ;;  %598 = vmatprep.subr.mxu0 %v349_v12  ;;  %v394_v51 = vld [vmem:[%s1534_s28 + $0x330] sm:$0xff]  ;;  %v393_v53 = vld [vmem:[%s1534_s28 + $0x328] sm:$0xff]  ;;  %v328_v54 = vld [vmem:[%s1534_s28 + $0x120] sm:$0xff] }
  0x75   : > { %675 = vmatprep.subr.mxu1 %v413_v13  ;;  %599 = vmatpush2.msra.mxu0 %v348_v14  ;;  %v392_v55 = vld [vmem:[%s1534_s28 + $0x320] sm:$0xff]  ;;  %v327_v56 = vld [vmem:[%s1534_s28 + $0x118] sm:$0xff]  ;;  %v326_v58 = vld [vmem:[%s1534_s28 + $0x110] sm:$0xff] }
  0x76   : > { %676 = vmatpush2.msra.mxu1 %v412_v15  ;;  %600 = vmatprep.subr.mxu0 %v347_v16  ;;  %v391_v57 = vld [vmem:[%s1534_s28 + $0x318] sm:$0xff]  ;;  %v390_v59 = vld [vmem:[%s1534_s28 + $0x310] sm:$0xff]  ;;  %v325_v60 = vld [vmem:[%s1534_s28 + $0x108] sm:$0xff] }
  0x77   : > { %677 = vmatprep.subr.mxu1 %v411_v17  ;;  %601 = vmatpush2.msra.mxu0 %v346_v18  ;;  %v389_v61 = vld [vmem:[%s1534_s28 + $0x308] sm:$0xff]  ;;  %v324_v62 = vld [vmem:[%s1534_s28 + $0x100] sm:$0xff]  ;;  %v279_v2 = vld [vmem:[#allocation2 + $0x18] sm:$0xff] }
  0x78   : > { %678 = vmatpush2.msra.mxu1 %v410_v19  ;;  %602 = vmatprep.subr.mxu0 %v345_v20  ;;  %v277_v63 = vld [vmem:[#allocation2 + $0x8] sm:$0xff]  ;;  %v388_v0 = vld [vmem:[%s1534_s28 + $0x300] sm:$0xff]  ;;  %v451_v3 = vld [vmem:[%s1534_s28 + $0x4f8] sm:$0xff] }
  0x79   : > { %679 = vmatprep.subr.mxu1 %v409_v21  ;;  %603 = vmatpush2.msra.mxu0 %v344_v22  ;;  %v276_v1 = vld [vmem:[#allocation2] sm:$0xff]  ;;  %v515_v4 = vld [vmem:[%s1534_s28 + $0x6f8] sm:$0xff]  ;;  %v278_v5 = vld [vmem:[#allocation2 + $0x10] sm:$0xff] }
  0x7a   : > { %680 = vmatpush2.msra.mxu1 %v408_v23  ;;  %604 = vmatprep.subr.mxu0 %v343_v24  ;;  %v450_v6 = vld [vmem:[%s1534_s28 + $0x4f0] sm:$0xff]  ;;  %v449_v8 = vld [vmem:[%s1534_s28 + $0x4e8] sm:$0xff]  ;;  %v448_v10 = vld [vmem:[%s1534_s28 + $0x4e0] sm:$0xff] }
  0x7b   : > { %681 = vmatprep.subr.mxu1 %v407_v25  ;;  %605 = vmatpush2.msra.mxu0 %v342_v26  ;;  %v514_v7 = vld [vmem:[%s1534_s28 + $0x6f0] sm:$0xff]  ;;  %v513_v9 = vld [vmem:[%s1534_s28 + $0x6e8] sm:$0xff]  ;;  %v512_v11 = vld [vmem:[%s1534_s28 + $0x6e0] sm:$0xff] }
  0x7c   : > { %682 = vmatpush2.msra.mxu1 %v406_v27  ;;  %606 = vmatprep.subr.mxu0 %v341_v28  ;;  %v447_v12 = vld [vmem:[%s1534_s28 + $0x4d8] sm:$0xff]  ;;  %v446_v14 = vld [vmem:[%s1534_s28 + $0x4d0] sm:$0xff]  ;;  %v445_v16 = vld [vmem:[%s1534_s28 + $0x4c8] sm:$0xff] }
  0x7d   : > { %683 = vmatprep.subr.mxu1 %v405_v29  ;;  %607 = vmatpush2.msra.mxu0 %v340_v30  ;;  %v511_v13 = vld [vmem:[%s1534_s28 + $0x6d8] sm:$0xff]  ;;  %v510_v15 = vld [vmem:[%s1534_s28 + $0x6d0] sm:$0xff]  ;;  %v509_v17 = vld [vmem:[%s1534_s28 + $0x6c8] sm:$0xff] }
  0x7e   : > { %684 = vmatpush2.msra.mxu1 %v404_v31  ;;  %608 = vmatprep.subr.mxu0 %v339_v32  ;;  %v444_v18 = vld [vmem:[%s1534_s28 + $0x4c0] sm:$0xff]  ;;  %v443_v20 = vld [vmem:[%s1534_s28 + $0x4b8] sm:$0xff]  ;;  %v442_v22 = vld [vmem:[%s1534_s28 + $0x4b0] sm:$0xff] }
  0x7f   : > { %685 = vmatprep.subr.mxu1 %v403_v33  ;;  %609 = vmatpush2.msra.mxu0 %v338_v34  ;;  %v508_v19 = vld [vmem:[%s1534_s28 + $0x6c0] sm:$0xff]  ;;  %v507_v21 = vld [vmem:[%s1534_s28 + $0x6b8] sm:$0xff]  ;;  %v506_v23 = vld [vmem:[%s1534_s28 + $0x6b0] sm:$0xff] }
  0x80   : > { %686 = vmatpush2.msra.mxu1 %v402_v35  ;;  %610 = vmatprep.subr.mxu0 %v337_v36  ;;  %v441_v24 = vld [vmem:[%s1534_s28 + $0x4a8] sm:$0xff]  ;;  %v440_v26 = vld [vmem:[%s1534_s28 + $0x4a0] sm:$0xff]  ;;  %v439_v28 = vld [vmem:[%s1534_s28 + $0x498] sm:$0xff] }
  0x81   : > { %687 = vmatprep.subr.mxu1 %v401_v37  ;;  %611 = vmatpush2.msra.mxu0 %v336_v38  ;;  %v505_v25 = vld [vmem:[%s1534_s28 + $0x6a8] sm:$0xff]  ;;  %v504_v27 = vld [vmem:[%s1534_s28 + $0x6a0] sm:$0xff]  ;;  %v503_v29 = vld [vmem:[%s1534_s28 + $0x698] sm:$0xff] }
  0x82   : > { %688 = vmatpush2.msra.mxu1 %v400_v39  ;;  %612 = vmatprep.subr.mxu0 %v335_v40  ;;  %v438_v30 = vld [vmem:[%s1534_s28 + $0x490] sm:$0xff]  ;;  %v437_v32 = vld [vmem:[%s1534_s28 + $0x488] sm:$0xff]  ;;  %v436_v34 = vld [vmem:[%s1534_s28 + $0x480] sm:$0xff] }
  0x83   : > { %689 = vmatprep.subr.mxu1 %v399_v41  ;;  %613 = vmatpush2.msra.mxu0 %v334_v42  ;;  %v502_v31 = vld [vmem:[%s1534_s28 + $0x690] sm:$0xff]  ;;  %v501_v33 = vld [vmem:[%s1534_s28 + $0x688] sm:$0xff]  ;;  %v500_v35 = vld [vmem:[%s1534_s28 + $0x680] sm:$0xff] }
  0x84   : > { %690 = vmatpush2.msra.mxu1 %v398_v43  ;;  %614 = vmatprep.subr.mxu0 %v333_v44  ;;  %v435_v36 = vld [vmem:[%s1534_s28 + $0x478] sm:$0xff]  ;;  %v434_v38 = vld [vmem:[%s1534_s28 + $0x470] sm:$0xff]  ;;  %v433_v40 = vld [vmem:[%s1534_s28 + $0x468] sm:$0xff] }
  0x85   : > { %691 = vmatprep.subr.mxu1 %v397_v45  ;;  %615 = vmatpush2.msra.mxu0 %v332_v46  ;;  %v499_v37 = vld [vmem:[%s1534_s28 + $0x678] sm:$0xff]  ;;  %v498_v39 = vld [vmem:[%s1534_s28 + $0x670] sm:$0xff]  ;;  %v497_v41 = vld [vmem:[%s1534_s28 + $0x668] sm:$0xff] }
  0x86   : > { %692 = vmatpush2.msra.mxu1 %v396_v47  ;;  %616 = vmatprep.subr.mxu0 %v331_v48  ;;  %v432_v42 = vld [vmem:[%s1534_s28 + $0x460] sm:$0xff]  ;;  %v431_v44 = vld [vmem:[%s1534_s28 + $0x458] sm:$0xff]  ;;  %v430_v46 = vld [vmem:[%s1534_s28 + $0x450] sm:$0xff] }
  0x87   : > { %693 = vmatprep.subr.mxu1 %v395_v49  ;;  %617 = vmatpush2.msra.mxu0 %v330_v50  ;;  %v496_v43 = vld [vmem:[%s1534_s28 + $0x660] sm:$0xff]  ;;  %v495_v45 = vld [vmem:[%s1534_s28 + $0x658] sm:$0xff]  ;;  %v494_v47 = vld [vmem:[%s1534_s28 + $0x650] sm:$0xff] }
  0x88   : > { %694 = vmatpush2.msra.mxu1 %v394_v51  ;;  %618 = vmatprep.subr.mxu0 %v329_v52  ;;  %v429_v48 = vld [vmem:[%s1534_s28 + $0x448] sm:$0xff]  ;;  %v428_v50 = vld [vmem:[%s1534_s28 + $0x440] sm:$0xff]  ;;  %v427_v52 = vld [vmem:[%s1534_s28 + $0x438] sm:$0xff] }
  0x89   : > { %695 = vmatprep.subr.mxu1 %v393_v53  ;;  %619 = vmatpush2.msra.mxu0 %v328_v54  ;;  %v493_v49 = vld [vmem:[%s1534_s28 + $0x648] sm:$0xff]  ;;  %v492_v51 = vld [vmem:[%s1534_s28 + $0x640] sm:$0xff]  ;;  %v491_v53 = vld [vmem:[%s1534_s28 + $0x638] sm:$0xff] }
  0x8a   : > { %696 = vmatpush2.msra.mxu1 %v392_v55  ;;  %620 = vmatprep.subr.mxu0 %v327_v56  ;;  %v426_v54 = vld [vmem:[%s1534_s28 + $0x430] sm:$0xff]  ;;  %v425_v56 = vld [vmem:[%s1534_s28 + $0x428] sm:$0xff] }
  0x8b   : > { %697 = vmatprep.subr.mxu1 %v391_v57  ;;  %621 = vmatpush2.msra.mxu0 %v326_v58  ;;  %v490_v55 = vld [vmem:[%s1534_s28 + $0x630] sm:$0xff]  ;;  %v489_v57 = vld [vmem:[%s1534_s28 + $0x628] sm:$0xff]  ;;  %v424_v58 = vld [vmem:[%s1534_s28 + $0x420] sm:$0xff] }
  0x8c   : > { %698 = vmatpush2.msra.mxu1 %v390_v59  ;;  %622 = vmatprep.subr.mxu0 %v325_v60  ;;  %v488_v59 = vld [vmem:[%s1534_s28 + $0x620] sm:$0xff]  ;;  %v423_v60 = vld [vmem:[%s1534_s28 + $0x418] sm:$0xff] }
  0x8d   : > { %699 = vmatprep.subr.mxu1 %v389_v61  ;;  %623 = vmatpush2.msra.mxu0 %v324_v62  ;;  %v487_v61 = vld [vmem:[%s1534_s28 + $0x618] sm:$0xff]  ;;  %v422_v62 = vld [vmem:[%s1534_s28 + $0x410] sm:$0xff] }
  0x8e   : > { %624 = vmatprep.mubr.f32.mxu0 %v277_v63  ;;  %700 = vmatpush2.msra.mxu1 %v388_v0  ;;  %v486_v63 = vld [vmem:[%s1534_s28 + $0x610] sm:$0xff]  ;;  %v421_v0 = vld [vmem:[%s1534_s28 + $0x408] sm:$0xff] }
  0x8f   : > { %625 = vmatmul.mubr.f32.vlgmr.msra.gmra.mxu0 %v276_v1  ;;  %701 = vmatprep.mubr.f32.mxu1 %v279_v2  ;;  %v485_v1 = vld [vmem:[%s1534_s28 + $0x608] sm:$0xff]  ;;  %v420_v2 = vld [vmem:[%s1534_s28 + $0x400] sm:$0xff] }
  0x90   : > { %714 = vmatprep.subr.mxu0 %v451_v3  ;;  %791 = vmatprep.subr.mxu1 %v515_v4  ;;  %v484_v3 = vld [vmem:[%s1534_s28 + $0x600] sm:$0xff]  ;;  %v483_v4 = vld [vmem:[%s1534_s28 + $0x5f8] sm:$0xff] }
  0x91   : > { %702 = vmatmul.mubr.f32.vlgmr.msra.gmra.mxu1 %v278_v5  ;;  %715 = vmatpush1.msra.mxu0 %v450_v6  ;;  %v547_v5 = vld [vmem:[%s1534_s28 + $0x7f8] sm:$0xff]  ;;  %v482_v6 = vld [vmem:[%s1534_s28 + $0x5f0] sm:$0xff] }
  0x92   : > { %792 = vmatpush1.msra.mxu1 %v514_v7  ;;  %716 = vmatprep.subr.mxu0 %v449_v8  ;;  %v546_v7 = vld [vmem:[%s1534_s28 + $0x7f0] sm:$0xff]  ;;  %v481_v8 = vld [vmem:[%s1534_s28 + $0x5e8] sm:$0xff] }
  0x93   : > { %793 = vmatprep.subr.mxu1 %v513_v9  ;;  %717 = vmatpush1.msra.mxu0 %v448_v10  ;;  %v545_v9 = vld [vmem:[%s1534_s28 + $0x7e8] sm:$0xff]  ;;  %v480_v10 = vld [vmem:[%s1534_s28 + $0x5e0] sm:$0xff] }
  0x94   : > { %794 = vmatpush1.msra.mxu1 %v512_v11  ;;  %718 = vmatprep.subr.mxu0 %v447_v12  ;;  %v544_v11 = vld [vmem:[%s1534_s28 + $0x7e0] sm:$0xff]  ;;  %v479_v12 = vld [vmem:[%s1534_s28 + $0x5d8] sm:$0xff] }
  0x95   : > { %795 = vmatprep.subr.mxu1 %v511_v13  ;;  %719 = vmatpush1.msra.mxu0 %v446_v14  ;;  %v543_v13 = vld [vmem:[%s1534_s28 + $0x7d8] sm:$0xff]  ;;  %v478_v14 = vld [vmem:[%s1534_s28 + $0x5d0] sm:$0xff] }
  0x96   : > { %796 = vmatpush1.msra.mxu1 %v510_v15  ;;  %720 = vmatprep.subr.mxu0 %v445_v16  ;;  %v542_v15 = vld [vmem:[%s1534_s28 + $0x7d0] sm:$0xff]  ;;  %v477_v16 = vld [vmem:[%s1534_s28 + $0x5c8] sm:$0xff] }
  0x97   : > { %797 = vmatprep.subr.mxu1 %v509_v17  ;;  %721 = vmatpush1.msra.mxu0 %v444_v18  ;;  %v541_v17 = vld [vmem:[%s1534_s28 + $0x7c8] sm:$0xff]  ;;  %v476_v18 = vld [vmem:[%s1534_s28 + $0x5c0] sm:$0xff] }
  0x98   : > { %798 = vmatpush1.msra.mxu1 %v508_v19  ;;  %722 = vmatprep.subr.mxu0 %v443_v20  ;;  %v540_v19 = vld [vmem:[%s1534_s28 + $0x7c0] sm:$0xff]  ;;  %v475_v20 = vld [vmem:[%s1534_s28 + $0x5b8] sm:$0xff] }
  0x99   : > { %799 = vmatprep.subr.mxu1 %v507_v21  ;;  %723 = vmatpush1.msra.mxu0 %v442_v22  ;;  %v539_v21 = vld [vmem:[%s1534_s28 + $0x7b8] sm:$0xff]  ;;  %v474_v22 = vld [vmem:[%s1534_s28 + $0x5b0] sm:$0xff] }
  0x9a   : > { %800 = vmatpush1.msra.mxu1 %v506_v23  ;;  %724 = vmatprep.subr.mxu0 %v441_v24  ;;  %v538_v23 = vld [vmem:[%s1534_s28 + $0x7b0] sm:$0xff]  ;;  %v473_v24 = vld [vmem:[%s1534_s28 + $0x5a8] sm:$0xff] }
  0x9b   : > { %801 = vmatprep.subr.mxu1 %v505_v25  ;;  %725 = vmatpush1.msra.mxu0 %v440_v26  ;;  %v537_v25 = vld [vmem:[%s1534_s28 + $0x7a8] sm:$0xff]  ;;  %v472_v26 = vld [vmem:[%s1534_s28 + $0x5a0] sm:$0xff] }
  0x9c   : > { %802 = vmatpush1.msra.mxu1 %v504_v27  ;;  %726 = vmatprep.subr.mxu0 %v439_v28  ;;  %v536_v27 = vld [vmem:[%s1534_s28 + $0x7a0] sm:$0xff]  ;;  %v471_v28 = vld [vmem:[%s1534_s28 + $0x598] sm:$0xff] }
  0x9d   : > { %803 = vmatprep.subr.mxu1 %v503_v29  ;;  %727 = vmatpush1.msra.mxu0 %v438_v30  ;;  %v535_v29 = vld [vmem:[%s1534_s28 + $0x798] sm:$0xff]  ;;  %v470_v30 = vld [vmem:[%s1534_s28 + $0x590] sm:$0xff] }
  0x9e   : > { %804 = vmatpush1.msra.mxu1 %v502_v31  ;;  %728 = vmatprep.subr.mxu0 %v437_v32  ;;  %v534_v31 = vld [vmem:[%s1534_s28 + $0x790] sm:$0xff]  ;;  %v469_v32 = vld [vmem:[%s1534_s28 + $0x588] sm:$0xff] }
  0x9f   : > { %805 = vmatprep.subr.mxu1 %v501_v33  ;;  %729 = vmatpush1.msra.mxu0 %v436_v34  ;;  %v533_v33 = vld [vmem:[%s1534_s28 + $0x788] sm:$0xff]  ;;  %v468_v34 = vld [vmem:[%s1534_s28 + $0x580] sm:$0xff] }
  0xa0   : > { %806 = vmatpush1.msra.mxu1 %v500_v35  ;;  %730 = vmatprep.subr.mxu0 %v435_v36  ;;  %v532_v35 = vld [vmem:[%s1534_s28 + $0x780] sm:$0xff]  ;;  %v467_v36 = vld [vmem:[%s1534_s28 + $0x578] sm:$0xff] }
  0xa1   : > { %807 = vmatprep.subr.mxu1 %v499_v37  ;;  %731 = vmatpush1.msra.mxu0 %v434_v38  ;;  %v531_v37 = vld [vmem:[%s1534_s28 + $0x778] sm:$0xff]  ;;  %v466_v38 = vld [vmem:[%s1534_s28 + $0x570] sm:$0xff] }
  0xa2   : > { %808 = vmatpush1.msra.mxu1 %v498_v39  ;;  %732 = vmatprep.subr.mxu0 %v433_v40  ;;  %v530_v39 = vld [vmem:[%s1534_s28 + $0x770] sm:$0xff]  ;;  %v465_v40 = vld [vmem:[%s1534_s28 + $0x568] sm:$0xff] }
  0xa3   : > { %809 = vmatprep.subr.mxu1 %v497_v41  ;;  %733 = vmatpush1.msra.mxu0 %v432_v42  ;;  %v529_v41 = vld [vmem:[%s1534_s28 + $0x768] sm:$0xff]  ;;  %v464_v42 = vld [vmem:[%s1534_s28 + $0x560] sm:$0xff] }
  0xa4   : > { %810 = vmatpush1.msra.mxu1 %v496_v43  ;;  %734 = vmatprep.subr.mxu0 %v431_v44  ;;  %v528_v43 = vld [vmem:[%s1534_s28 + $0x760] sm:$0xff]  ;;  %v463_v44 = vld [vmem:[%s1534_s28 + $0x558] sm:$0xff] }
  0xa5   : > { %811 = vmatprep.subr.mxu1 %v495_v45  ;;  %735 = vmatpush1.msra.mxu0 %v430_v46  ;;  %v527_v45 = vld [vmem:[%s1534_s28 + $0x758] sm:$0xff]  ;;  %v462_v46 = vld [vmem:[%s1534_s28 + $0x550] sm:$0xff] }
  0xa6   : > { %812 = vmatpush1.msra.mxu1 %v494_v47  ;;  %736 = vmatprep.subr.mxu0 %v429_v48  ;;  %v526_v47 = vld [vmem:[%s1534_s28 + $0x750] sm:$0xff]  ;;  %v461_v48 = vld [vmem:[%s1534_s28 + $0x548] sm:$0xff] }
  0xa7   : > { %813 = vmatprep.subr.mxu1 %v493_v49  ;;  %737 = vmatpush1.msra.mxu0 %v428_v50  ;;  %v525_v49 = vld [vmem:[%s1534_s28 + $0x748] sm:$0xff]  ;;  %v460_v50 = vld [vmem:[%s1534_s28 + $0x540] sm:$0xff] }
  0xa8   : > { %814 = vmatpush1.msra.mxu1 %v492_v51  ;;  %738 = vmatprep.subr.mxu0 %v427_v52  ;;  %v524_v51 = vld [vmem:[%s1534_s28 + $0x740] sm:$0xff]  ;;  %v459_v52 = vld [vmem:[%s1534_s28 + $0x538] sm:$0xff] }
  0xa9   : > { %815 = vmatprep.subr.mxu1 %v491_v53  ;;  %739 = vmatpush1.msra.mxu0 %v426_v54  ;;  %v523_v53 = vld [vmem:[%s1534_s28 + $0x738] sm:$0xff]  ;;  %v285_v54 = vld [vmem:[#allocation2 + $0x48] sm:$0xff] }
  0xaa   : > { %816 = vmatpush1.msra.mxu1 %v490_v55  ;;  %740 = vmatprep.subr.mxu0 %v425_v56  ;;  %v458_v55 = vld [vmem:[%s1534_s28 + $0x530] sm:$0xff] }
  0xab   : > { %817 = vmatprep.subr.mxu1 %v489_v57  ;;  %741 = vmatpush1.msra.mxu0 %v424_v58  ;;  %v522_v56 = vld [vmem:[%s1534_s28 + $0x730] sm:$0xff]  ;;  %v284_v57 = vld [vmem:[#allocation2 + $0x40] sm:$0xff]  ;;  %v457_v58 = vld [vmem:[%s1534_s28 + $0x528] sm:$0xff] }
  0xac   : > { %818 = vmatpush1.msra.mxu1 %v488_v59  ;;  %742 = vmatprep.subr.mxu0 %v423_v60  ;;  %v521_v59 = vld [vmem:[%s1534_s28 + $0x728] sm:$0xff]  ;;  %v287_v60 = vld [vmem:[#allocation2 + $0x58] sm:$0xff] }
  0xad   : > { %819 = vmatprep.subr.mxu1 %v487_v61  ;;  %743 = vmatpush1.msra.mxu0 %v422_v62  ;;  %v456_v61 = vld [vmem:[%s1534_s28 + $0x520] sm:$0xff] }
  0xae   : > { %820 = vmatpush1.msra.mxu1 %v486_v63  ;;  %744 = vmatprep.subr.mxu0 %v421_v0  ;;  %v520_v62 = vld [vmem:[%s1534_s28 + $0x720] sm:$0xff]  ;;  %v455_v63 = vld [vmem:[%s1534_s28 + $0x518] sm:$0xff]  ;;  %v286_v0 = vld [vmem:[#allocation2 + $0x50] sm:$0xff] }
  0xaf   : > { %821 = vmatprep.subr.mxu1 %v485_v1  ;;  %745 = vmatpush1.msra.mxu0 %v420_v2  ;;  %v519_v1 = vld [vmem:[%s1534_s28 + $0x718] sm:$0xff]  ;;  %v454_v2 = vld [vmem:[%s1534_s28 + $0x510] sm:$0xff] }
  0xb0   : > { %822 = vmatpush1.msra.mxu1 %v484_v3  ;;  %746 = vmatprep.subr.mxu0 %v483_v4  ;;  %v518_v3 = vld [vmem:[%s1534_s28 + $0x710] sm:$0xff]  ;;  %v453_v4 = vld [vmem:[%s1534_s28 + $0x508] sm:$0xff] }
  0xb1   : > { %823 = vmatprep.subr.mxu1 %v547_v5  ;;  %747 = vmatpush2.msra.mxu0 %v482_v6  ;;  %v517_v5 = vld [vmem:[%s1534_s28 + $0x708] sm:$0xff]  ;;  %v452_v6 = vld [vmem:[%s1534_s28 + $0x500] sm:$0xff] }
  0xb2   : > { %824 = vmatpush2.msra.mxu1 %v546_v7  ;;  %748 = vmatprep.subr.mxu0 %v481_v8  ;;  %v281_v7 = vld [vmem:[#allocation2 + $0x28] sm:$0xff]  ;;  %v516_v8 = vld [vmem:[%s1534_s28 + $0x700] sm:$0xff] }
  0xb3   : > { %825 = vmatprep.subr.mxu1 %v545_v9  ;;  %749 = vmatpush2.msra.mxu0 %v480_v10  ;;  %v283_v9 = vld [vmem:[#allocation2 + $0x38] sm:$0xff]  ;;  %v280_v10 = vld [vmem:[#allocation2 + $0x20] sm:$0xff] }
  0xb4   : > { %826 = vmatpush2.msra.mxu1 %v544_v11  ;;  %750 = vmatprep.subr.mxu0 %v479_v12  ;;  %v282_v11 = vld [vmem:[#allocation2 + $0x30] sm:$0xff]  ;;  %v289_v12 = vld [vmem:[#allocation2 + $0x68] sm:$0xff] }
  0xb5   : > { %827 = vmatprep.subr.mxu1 %v543_v13  ;;  %751 = vmatpush2.msra.mxu0 %v478_v14  ;;  %v291_v13 = vld [vmem:[#allocation2 + $0x78] sm:$0xff]  ;;  %v288_v14 = vld [vmem:[#allocation2 + $0x60] sm:$0xff] }
  0xb6   : > { %828 = vmatpush2.msra.mxu1 %v542_v15  ;;  %752 = vmatprep.subr.mxu0 %v477_v16  ;;  %v290_v15 = vld [vmem:[#allocation2 + $0x70] sm:$0xff]  ;;  %v550_v16 = vlaneseq }
  0xb7   : > { %829 = vmatprep.subr.mxu1 %v541_v17  ;;  %753 = vmatpush2.msra.mxu0 %v476_v18 }
  0xb8   : > { %830 = vmatpush2.msra.mxu1 %v540_v19  ;;  %754 = vmatprep.subr.mxu0 %v475_v20  ;;  %v551_v17 = vshrl.u32 %v550_v16, 7  ;;  %v548_v19 = vld [vmem:[%s239_s20] sm:$0x3] }
  0xb9   : > { %831 = vmatprep.subr.mxu1 %v539_v21  ;;  %755 = vmatpush2.msra.mxu0 %v474_v22 }
  0xba   : > { %832 = vmatpush2.msra.mxu1 %v538_v23  ;;  %756 = vmatprep.subr.mxu0 %v473_v24  ;;  %v552_v18 = vsub.s32 0, %v551_v17  ;;  %v556_v22 = vsub.s32 1, %v551_v17 }
  0xbb   : > { %833 = vmatprep.subr.mxu1 %v537_v25  ;;  %757 = vmatpush2.msra.mxu0 %v472_v26 }
  0xbc   : > { %834 = vmatpush2.msra.mxu1 %v536_v27  ;;  %758 = vmatprep.subr.mxu0 %v471_v28  ;;  %v553_v23 = vrot.slane %v548_v19, %v552_v18  ;;  %v557_v25 = vrot.slane %v548_v19, %v556_v22 }
  0xbd   : > { %835 = vmatprep.subr.mxu1 %v535_v29  ;;  %759 = vmatpush2.msra.mxu0 %v470_v30 }
  0xbe   : > { %836 = vmatpush2.msra.mxu1 %v534_v31  ;;  %760 = vmatprep.subr.mxu0 %v469_v32 }
  0xbf   : > { %837 = vmatprep.subr.mxu1 %v533_v33  ;;  %761 = vmatpush2.msra.mxu0 %v468_v34 }
  0xc0   : > { %838 = vmatpush2.msra.mxu1 %v532_v35  ;;  %762 = vmatprep.subr.mxu0 %v467_v36 }
  0xc1   : > { %839 = vmatprep.subr.mxu1 %v531_v37  ;;  %763 = vmatpush2.msra.mxu0 %v466_v38 }
  0xc2   : > { %840 = vmatpush2.msra.mxu1 %v530_v39  ;;  %764 = vmatprep.subr.mxu0 %v465_v40 }
  0xc3   : > { %841 = vmatprep.subr.mxu1 %v529_v41  ;;  %765 = vmatpush2.msra.mxu0 %v464_v42 }
  0xc4   : > { %842 = vmatpush2.msra.mxu1 %v528_v43  ;;  %766 = vmatprep.subr.mxu0 %v463_v44 }
  0xc5   : > { %843 = vmatprep.subr.mxu1 %v527_v45  ;;  %767 = vmatpush2.msra.mxu0 %v462_v46 }
  0xc6   : > { %844 = vmatpush2.msra.mxu1 %v526_v47  ;;  %768 = vmatprep.subr.mxu0 %v461_v48 }
  0xc7   : > { %845 = vmatprep.subr.mxu1 %v525_v49  ;;  %769 = vmatpush2.msra.mxu0 %v460_v50 }
  0xc8   : > { %846 = vmatpush2.msra.mxu1 %v524_v51  ;;  %770 = vmatprep.subr.mxu0 %v459_v52 }
  0xc9   : > { %847 = vmatprep.subr.mxu1 %v523_v53  ;;  %630 = vmatprep.mubr.f32.mxu0 %v285_v54 }
  0xca   : > { %771 = vmatpush2.msra.mxu0 %v458_v55  ;;  %848 = vmatpush2.msra.mxu1 %v522_v56 }
  0xcb   : > { %631 = vmatmul.mubr.f32.gmra.mxu0 %v284_v57  ;;  %772 = vmatprep.subr.mxu0 %v457_v58 }
  0xcc   : > { %849 = vmatprep.subr.mxu1 %v521_v59  ;;  %707 = vmatprep.mubr.f32.mxu1 %v287_v60 }
  0xcd   : > { %773 = vmatpush2.msra.mxu0 %v456_v61  ;;  %850 = vmatpush2.msra.mxu1 %v520_v62 }
  0xce   : > { %774 = vmatprep.subr.mxu0 %v455_v63  ;;  %708 = vmatmul.mubr.f32.gmra.mxu1 %v286_v0 }
  0xcf   : > { %851 = vmatprep.subr.mxu1 %v519_v1  ;;  %775 = vmatpush2.msra.mxu0 %v454_v2 }
  0xd0   : > { %852 = vmatpush2.msra.mxu1 %v518_v3  ;;  %776 = vmatprep.subr.mxu0 %v453_v4 }
  0xd1   : > { %853 = vmatprep.subr.mxu1 %v517_v5  ;;  %777 = vmatpush2.msra.mxu0 %v452_v6 }
  0xd2   : > { %778 = vmatprep.mubr.f32.mxu0 %v281_v7  ;;  %854 = vmatpush2.msra.mxu1 %v516_v8 }
  0xd3   : > { %855 = vmatprep.mubr.f32.mxu1 %v283_v9  ;;  %779 = vmatmul.mubr.f32.vlgmr.msra.gmra.mxu0 %v280_v10 }
  0xd4   : > { %856 = vmatmul.mubr.f32.vlgmr.msra.gmra.mxu1 %v282_v11  ;;  %784 = vmatprep.mubr.f32.mxu0 %v289_v12 }
  0xd5   : > { %861 = vmatprep.mubr.f32.mxu1 %v291_v13 }
  0xd7   : > { %785 = vmatmul.mubr.f32.gmra.mxu0 %v288_v14 }
  0xd8   : > { %862 = vmatmul.mubr.f32.gmra.mxu1 %v290_v15 }
 0x14f   : > { %v626_v20 = vpop.f32.mrf.mxu0 }
 0x150   : > { %v627_v28 = vadd.f32 %v626_v20, %v553_v23 }
 0x151   : > { %v703_v21 = vpop.f32.mrf.mxu1  ;;  %v628_v24 = vpop.f32.mrf.mxu0 }
 0x152   : > { %v629_v30 = vadd.f32 %v628_v24, %v557_v25  ;;  %v704_v33 = vadd.f32 %v703_v21, %v627_v28 }
 0x153   : > { %v705_v26 = vpop.f32.mrf.mxu1 }
 0x154   : > { %v706_v37 = vadd.f32 %v705_v26, %v629_v30 }
 0x18b   : > { %v632_v27 = vpop.f32.mrf.mxu0 }
 0x18c   : > { %v633_v34 = vadd.f32 %v632_v27, %v553_v23 }
 0x18d   : > { %v634_v32 = vpop.f32.mrf.mxu0 }
 0x18e   : > { %v709_v29 = vpop.f32.mrf.mxu1  ;;  %v635_v38 = vadd.f32 %v634_v32, %v557_v25 }
 0x18f   : > { %v710_v42 = vadd.f32 %v709_v29, %v633_v34 }
 0x190   : > { %v711_v31 = vpop.f32.mrf.mxu1 }
 0x191   : > { %v712_v47 = vadd.f32 %v711_v31, %v635_v38 }
 0x193   : > { %v780_v35 = vpop.f32.mrf.mxu0 }
 0x194   : > { %v857_v36 = vpop.f32.mrf.mxu1  ;;  %v781_v39 = vadd.f32 %v780_v35, %v704_v33 }
 0x195   : > { %v782_v40 = vpop.f32.mrf.mxu0 }
 0x196   : > { %v859_v41 = vpop.f32.mrf.mxu1  ;;  %v858_v43 = vadd.f32 %v857_v36, %v781_v39  ;;  %v783_v44 = vadd.f32 %v782_v40, %v706_v37 }
 0x197   : > { %v786_v45 = vpop.f32.mrf.mxu0 }
 0x198   : > { %v863_v46 = vpop.f32.mrf.mxu1  ;;  %v1067_v48 = vmul.f32 -1.442695, %v858_v43  ;;  %v860_v49 = vadd.f32 %v859_v41, %v783_v44  ;;  %v787_v50 = vadd.f32 %v786_v45, %v710_v42 }
 0x199   : > { %v788_v51 = vpop.f32.mrf.mxu0 }
 0x19a   : > { %1169 = vpow2.f32 %v1067_v48  ;;  %v1068_v52 = vmul.f32 -1.442695, %v860_v49  ;;  %v864_v53 = vadd.f32 %v863_v46, %v787_v50  ;;  %v789_v54 = vadd.f32 %v788_v51, %v712_v47  ;;  %v865_v55 = vpop.f32.mrf.mxu1 }
 0x19c   : > { %1171 = vpow2.f32 %v1068_v52  ;;  %v1069_v56 = vmul.f32 -1.442695, %v864_v53  ;;  %v866_v57 = vadd.f32 %v865_v55, %v789_v54 }
 0x19e   : > { %1173 = vpow2.f32 %v1069_v56  ;;  %v1070_v58 = vmul.f32 -1.442695, %v866_v57 }
 0x1a0   : > { %1175 = vpow2.f32 %v1070_v58 }
 0x1a7   : > { %v1170_v59 = vpop.eup %1169 }
 0x1a8   : > { %v880_v60 = vadd.f32 1.0, %v1170_v59 }
 0x1a9   : > { %v1172_v61 = vpop.eup %1171 }
 0x1aa   : > { %1177 = vrcp.f32 %v880_v60  ;;  %v881_v62 = vadd.f32 1.0, %v1172_v61 }
 0x1ab   : > { %v1174_v63 = vpop.eup %1173 }
 0x1ac   : > { %1179 = vrcp.f32 %v881_v62  ;;  %v882_v0 = vadd.f32 1.0, %v1174_v63 }
 0x1ad   : > { %v1176_v1 = vpop.eup %1175 }
 0x1ae   : > { %1181 = vrcp.f32 %v882_v0  ;;  %v883_v2 = vadd.f32 1.0, %v1176_v1 }
 0x1b0   : > { %1183 = vrcp.f32 %v883_v2 }
 0x1b7   : > { %v1178_v3 = vpop.eup %1177 }
 0x1b8   : > { %v892_v4 = vmul.f32 %v1178_v3, %v858_v43 }
 0x1b9   : > { %v1180_v5 = vpop.eup %1179 }
 0x1ba   : > { %v896_v6 = vmul.f32 0.5, %v892_v4  ;;  %v893_v7 = vmul.f32 %v1180_v5, %v860_v49 }
 0x1bb   : > { %v1182_v8 = vpop.eup %1181 }
 0x1bc   : > { %v1071_v9 = vclamps-f32 %v896_v6, 1.0  ;;  %v897_v10 = vmul.f32 0.5, %v893_v7  ;;  %v894_v11 = vmul.f32 %v1182_v8, %v864_v53 }
 0x1bd   : > { %v1184_v12 = vpop.eup %1183 }
 0x1be   : > { %1185 = vtanh.f32 %v1071_v9  ;;  %v1072_v13 = vclamps-f32 %v897_v10, 1.0  ;;  %v898_v14 = vmul.f32 0.5, %v894_v11  ;;  %v895_v15 = vmul.f32 %v1184_v12, %v866_v57 }
 0x1c0   : > { %1187 = vtanh.f32 %v1072_v13  ;;  %v1073_v16 = vclamps-f32 %v898_v14, 1.0  ;;  %v899_v17 = vmul.f32 0.5, %v895_v15 }
 0x1c2   : > { %1189 = vtanh.f32 %v1073_v16  ;;  %v1074_v18 = vclamps-f32 %v899_v17, 1.0 }
 0x1c4   : > { %1191 = vtanh.f32 %v1074_v18 }
 0x1cb   : > { %v1186_v19 = vpop.eup %1185 }
 0x1cc   : > { %912 = vst [vmem:[%s266_s10] sm:$0xff] %v1186_v19 }
 0x1cd   : > { %v1188_v20 = vpop.eup %1187 }
 0x1ce   : > { %913 = vst [vmem:[%s266_s10 + $0x8] sm:$0xff] %v1188_v20 }
 0x1cf   : > { %v1190_v21 = vpop.eup %1189 }
 0x1d0   : > { %914 = vst [vmem:[%s266_s10 + $0x10] sm:$0xff] %v1190_v21 }
 0x1d1   : > { %v1192_v22 = vpop.eup %1191 }
 0x1d2   : > { %915 = vst [vmem:[%s266_s10 + $0x18] sm:$0xff] %v1192_v22 }
 0x1d3   : > { %1288 = shalt.err (!%p1285_p6)
}
 0x1d4   : > { %s1289_s29 = scalar_lea.hbm %s1802_s8, 512  ;;  %s1293_s5 = scalar_lea.hbm %s1855_s3, 1024 }
 0x1d5   : > { %p1290_p8 = scmp.ne.s32.totalorder %s1802_s8, %s1289_s29  ;;  %p1294_p11 = scmp.lt.s32.totalorder %s1802_s8, %s1855_s3 }
 0x1d6   : > { %p1295_p12 = scmp.lt.s32.totalorder %s1293_s5, %s1289_s29 }
 0x1d7   : > { %p1291_p5 = pnand %p1290_p8, %p1868_p10 }
 0x1d8   : > { %p1296_p13 = por %p1295_p12, %p1294_p11 }
 0x1d9   : > { %p1292_p9 = pneg %p1291_p5 }
 0x1db   : > { %p1297_p7 = pnand %p1296_p13, %p1292_p9 }
 0x1dd   : > { %1300 = shalt.err (!%p1297_p7)
}
 0x1de   : > { %s1370_s27 = smov 256   ;;  %s1371_s10 = smov 512  }
 0x1df   : > { %s1372_s6 = smov 16  }
 0x1e0   : > { %1091 = dma.vmem_to_hbm [thread:$0]  (%p1868_p10), %s1804_s19, 512, %s1802_s8, %s917_s15, %s1370_s27, %s1371_s10, %s1372_s6  }
 0x1e1 PF: > { %s947_s4 = sand.u32 1, %s1339_s12   ;;  %p1869_p2 = scmp.ne.s32.totalorder %s1862_s26, 0 }
 0x1e2   : > { %p1870_p1 = scmp.ge.s32.totalorder %s1359_s17, 2  ;;  %s948_s9 = scalar_lea.sflag [#allocation4], %s947_s4 }
 0x1e4   : > { %p1105_p0 = pnand %p1870_p1, %p1869_p2 }
 0x1e6   : > { %p1106_p3 = pneg %p1105_p0 }
 0x1e8   : > { %1334 = dma.done.wait (%p1106_p3), %s948_s9, 512  }
 0x1e9   : > { %1336 = vsyncadd (%p1106_p3), %s948_s9, 4294966784  ;;  %s20_s17 = sadd.s32 1, %s1359_s17   ;;  %s1871_s12 = smov %s1343_s13 }
 0x1ea   : > { %p17_p4 = scmp.ge.s32.totalorder %s20_s17, 4   ;;  %s1872_s13 = smov %s1347_s14 }
 0x1eb   : > { %s1873_s14 = smov %s1441_s24  ;;  %s1874_s15 = smov %s1355_s16 }
 0x1ec   : > { %s1875_s16 = smov %s1877_s18  ;;  %19 = sbr.rel (!%p17_p4) target bundleno = 7 (0x7), region = 93 }
 0x1f1   :  { %953 = vsyncpa [#allocation3], 1 }
 0x1f2   :  { %955 = vsyncpa [#allocation3 + $0x1], 1 }
 0x1f3   :  { %956 = vsyncpa [#allocation6], 1 }
 0x1f4   :  { %958 = vsyncpa [#allocation6 + $0x1], 1 }
 0x1f5   :  { %959 = vsyncpa [#allocation4], 1 }
 0x1f6   :  { %961 = vsyncpa [#allocation4 + $0x1], 1 }

</bundles_post_ra>
